<compile_context>
chip_gen: v5e
topology: v5e:2x2
jax: 0.10.0
libtpu: 0.0.40
codegen_flags: <defaults>
</compile_context>

<pallas_src>
import math
import functools

import jax
import jax.numpy as jnp
from jax.experimental import pallas as pl
from jax.experimental.pallas import tpu as pltpu


# ------------------------------- Pallas kernel --------------------------------
def position_encoding_kernel(times_ref, x_ref, pe_ref, out_ref):
    """out[b, n, :] = x[b, n, :] + pe[times[b, n], :] for one batch tile.

    times_ref : SMEM (B, N) int32   (scalar-prefetched, full array)
    x_ref     : VMEM (TB, N, D)     (current batch tile)
    pe_ref    : VMEM (L, D)         (resident across all grid steps)
    out_ref   : VMEM (TB, N, D)
    """
    TB, N, D = x_ref.shape
    b0 = pl.program_id(0) * TB
    for tb in range(TB):                              # static unroll, TB small
        rows = [pe_ref[pl.ds(times_ref[b0 + tb, n], 1), :] for n in range(N)]
        pe_tile = jnp.concatenate(rows, axis=0)       # (N, D) gathered tile
        out_ref[tb] = x_ref[tb] + pe_tile             # lane-dense add + store


# --------------------------------- wrapper ------------------------------------
@functools.partial(jax.jit, static_argnames=("batch_tile",))
def position_encoding(x, times, pe_table, *, batch_tile=8):
    """Mirrors PositionEncoding.forward(x, times)."""
    B, N, D = x.shape
    L = pe_table.shape[0]

    # PyTorch buffer indexing would error on OOB / wrap on negative indices;
    # clamp so a bad index can never read uninitialized VMEM (no in-kernel
    # bounds checks on TPU).
    idx = jnp.clip(times.astype(jnp.int32), 0, L - 1)

    TB = min(batch_tile, B)
    pad = (-B) % TB                                   # static under jit
    if pad:
        x = jnp.concatenate([x, jnp.zeros((pad, N, D), x.dtype)], axis=0)
        idx = jnp.concatenate([idx, jnp.zeros((pad, N), idx.dtype)], axis=0)
    Bp = B + pad

    out = pl.pallas_call(
        position_encoding_kernel,
        out_shape=jax.ShapeDtypeStruct((Bp, N, D), x.dtype),
        grid_spec=pltpu.PrefetchScalarGridSpec(
            num_scalar_prefetch=1,                    # `idx` -> SMEM
            grid=(Bp // TB,),
            in_specs=[
                pl.BlockSpec((TB, N, D), lambda i, _: (i, 0, 0)),  # x tile
                pl.BlockSpec((L, D),     lambda i, _: (0, 0)),     # pe resident
            ],
            out_specs=pl.BlockSpec((TB, N, D), lambda i, _: (i, 0, 0)),
        ),
        compiler_params=pltpu.CompilerParams(
            dimension_semantics=("parallel",)),       # megacore-splittable
    )(idx, x, pe_table)
    return out[:B] if pad else out


# --------------------------- PE table (buffer init) ----------------------------
def make_pe_table(n_filters, max_len):
    """Sinusoidal PositionEncoding table, identical to the PyTorch buffer."""
    position = jnp.arange(0, max_len, dtype=jnp.float32)[:, None]          # (L,1)
    div_term = jnp.exp(jnp.arange(0, n_filters, 2, dtype=jnp.float32)
                       * (-(math.log(10000.0) / n_filters)))               # (D/2,)
    pe = jnp.zeros((max_len, n_filters), dtype=jnp.float32)
    pe = pe.at[:, 0::2].set(jnp.sin(position * div_term))
    pe = pe.at[:, 1::2].set(jnp.cos(position * div_term))
    return pe


# ------------------------------------ main -------------------------------------
if __name__ == "__main__":
    key = jax.random.PRNGKey(0)
    kx, kt = jax.random.split(key)

    # Small but TPU-friendly shapes: batch fills f32 sublanes (8), feature dim
    # is lane-dense (128).  The kernel itself works for any N / D because the
    # block covers the full last-two dims.
    B, N, D, MAX_LEN = 8, 8, 128, 64
    pe_table = make_pe_table(D, MAX_LEN)                                   # (L, D)
    x = jax.random.normal(kx, (B, N, D), dtype=jnp.float32)                # B x nodes x D
    times = jax.random.randint(kt, (B, N), 0, MAX_LEN).astype(jnp.float32) # B x nodes

    out = position_encoding(x, times, pe_table)
    jax.block_until_ready(out)
    assert out.shape == (B, N, D)

    # Pure-JAX reference of the module's forward (exact gather + add).
    ref = x + jnp.take(pe_table, times.astype(jnp.int32), axis=0)
    assert jnp.allclose(out, ref, atol=1e-6, rtol=1e-6)

    print("KERNEL_OK")
</pallas_src>

<mosaic_0001>
module attributes {stable_mosaic.version = 11 : i64} {
  func.func @position_encoding_kernel(%arg0: i32, %arg1: memref<8x8xi32, #tpu.memory_space<smem>>, %arg2: memref<8x8x128xf32, #tpu.memory_space<vmem>>, %arg3: memref<64x128xf32, #tpu.memory_space<vmem>>, %arg4: memref<8x8x128xf32, #tpu.memory_space<vmem>>) attributes {dimension_semantics = [#tpu.dimension_semantics<parallel>], iteration_bounds = array<i64: 1>, scalar_prefetch = 1 : i64, scratch_operands = 0 : i64, tpu.core_type = #tpu.core_type<tc>, window_params = [{transform_indices = @transform_0, window_bounds = array<i64: 8, 8, 128>}, {pipeline_mode = #tpu.pipeline_mode<synchronous>, transform_indices = @transform_1, window_bounds = array<i64: 64, 128>}, {transform_indices = @transform_2, window_bounds = array<i64: 8, 8, 128>}]} {
    %c8_i32 = arith.constant 8 : i32
    %0 = arith.muli %arg0, %c8_i32 : i32
    %c0_i32 = arith.constant 0 : i32
    %1 = arith.addi %0, %c0_i32 : i32
    %2 = arith.index_cast %1 : i32 to index
    %c0 = arith.constant 0 : index
    %3 = memref.load %arg1[%2, %c0] : memref<8x8xi32, #tpu.memory_space<smem>>
    %4 = arith.index_cast %3 : i32 to index
    %c0_0 = arith.constant 0 : index
    %5 = vector.load %arg3[%4, %c0_0] : memref<64x128xf32, #tpu.memory_space<vmem>>, vector<1x128xf32>
    %c0_i32_1 = arith.constant 0 : i32
    %6 = arith.addi %0, %c0_i32_1 : i32
    %7 = arith.index_cast %6 : i32 to index
    %c1 = arith.constant 1 : index
    %8 = memref.load %arg1[%7, %c1] : memref<8x8xi32, #tpu.memory_space<smem>>
    %9 = arith.index_cast %8 : i32 to index
    %c0_2 = arith.constant 0 : index
    %10 = vector.load %arg3[%9, %c0_2] : memref<64x128xf32, #tpu.memory_space<vmem>>, vector<1x128xf32>
    %c0_i32_3 = arith.constant 0 : i32
    %11 = arith.addi %0, %c0_i32_3 : i32
    %12 = arith.index_cast %11 : i32 to index
    %c2 = arith.constant 2 : index
    %13 = memref.load %arg1[%12, %c2] : memref<8x8xi32, #tpu.memory_space<smem>>
    %14 = arith.index_cast %13 : i32 to index
    %c0_4 = arith.constant 0 : index
    %15 = vector.load %arg3[%14, %c0_4] : memref<64x128xf32, #tpu.memory_space<vmem>>, vector<1x128xf32>
    %c0_i32_5 = arith.constant 0 : i32
    %16 = arith.addi %0, %c0_i32_5 : i32
    %17 = arith.index_cast %16 : i32 to index
    %c3 = arith.constant 3 : index
    %18 = memref.load %arg1[%17, %c3] : memref<8x8xi32, #tpu.memory_space<smem>>
    %19 = arith.index_cast %18 : i32 to index
    %c0_6 = arith.constant 0 : index
    %20 = vector.load %arg3[%19, %c0_6] : memref<64x128xf32, #tpu.memory_space<vmem>>, vector<1x128xf32>
    %c0_i32_7 = arith.constant 0 : i32
    %21 = arith.addi %0, %c0_i32_7 : i32
    %22 = arith.index_cast %21 : i32 to index
    %c4 = arith.constant 4 : index
    %23 = memref.load %arg1[%22, %c4] : memref<8x8xi32, #tpu.memory_space<smem>>
    %24 = arith.index_cast %23 : i32 to index
    %c0_8 = arith.constant 0 : index
    %25 = vector.load %arg3[%24, %c0_8] : memref<64x128xf32, #tpu.memory_space<vmem>>, vector<1x128xf32>
    %c0_i32_9 = arith.constant 0 : i32
    %26 = arith.addi %0, %c0_i32_9 : i32
    %27 = arith.index_cast %26 : i32 to index
    %c5 = arith.constant 5 : index
    %28 = memref.load %arg1[%27, %c5] : memref<8x8xi32, #tpu.memory_space<smem>>
    %29 = arith.index_cast %28 : i32 to index
    %c0_10 = arith.constant 0 : index
    %30 = vector.load %arg3[%29, %c0_10] : memref<64x128xf32, #tpu.memory_space<vmem>>, vector<1x128xf32>
    %c0_i32_11 = arith.constant 0 : i32
    %31 = arith.addi %0, %c0_i32_11 : i32
    %32 = arith.index_cast %31 : i32 to index
    %c6 = arith.constant 6 : index
    %33 = memref.load %arg1[%32, %c6] : memref<8x8xi32, #tpu.memory_space<smem>>
    %34 = arith.index_cast %33 : i32 to index
    %c0_12 = arith.constant 0 : index
    %35 = vector.load %arg3[%34, %c0_12] : memref<64x128xf32, #tpu.memory_space<vmem>>, vector<1x128xf32>
    %c0_i32_13 = arith.constant 0 : i32
    %36 = arith.addi %0, %c0_i32_13 : i32
    %37 = arith.index_cast %36 : i32 to index
    %c7 = arith.constant 7 : index
    %38 = memref.load %arg1[%37, %c7] : memref<8x8xi32, #tpu.memory_space<smem>>
    %39 = arith.index_cast %38 : i32 to index
    %c0_14 = arith.constant 0 : index
    %40 = vector.load %arg3[%39, %c0_14] : memref<64x128xf32, #tpu.memory_space<vmem>>, vector<1x128xf32>
    %41 = tpu.concatenate %5, %10, %15, %20, %25, %30, %35, %40 in 0 : vector<1x128xf32>, vector<1x128xf32>, vector<1x128xf32>, vector<1x128xf32>, vector<1x128xf32>, vector<1x128xf32>, vector<1x128xf32>, vector<1x128xf32> -> vector<8x128xf32>
    %c0_15 = arith.constant 0 : index
    %c0_16 = arith.constant 0 : index
    %c0_17 = arith.constant 0 : index
    %42 = vector.load %arg2[%c0_15, %c0_16, %c0_17] : memref<8x8x128xf32, #tpu.memory_space<vmem>>, vector<1x8x128xf32>
    %43 = vector.shape_cast %42 : vector<1x8x128xf32> to vector<8x128xf32>
    %44 = arith.addf %43, %41 : vector<8x128xf32>
    %c0_18 = arith.constant 0 : index
    %c0_19 = arith.constant 0 : index
    %c0_20 = arith.constant 0 : index
    %45 = vector.load %arg4[%c0_18, %c0_19, %c0_20] : memref<8x8x128xf32, #tpu.memory_space<vmem>>, vector<1x8x128xf32>
    %46 = vector.shape_cast %45 : vector<1x8x128xf32> to vector<8x128xf32>
    %47 = vector.shape_cast %44 : vector<8x128xf32> to vector<1x8x128xf32>
    tpu.vector_store %arg4[%c0_18, %c0_19, %c0_20], %47 {strides = array<i32>} : memref<8x8x128xf32, #tpu.memory_space<vmem>>, vector<1x8x128xf32>,
    %c1_i32 = arith.constant 1 : i32
    %48 = arith.addi %0, %c1_i32 : i32
    %49 = arith.index_cast %48 : i32 to index
    %c0_21 = arith.constant 0 : index
    %50 = memref.load %arg1[%49, %c0_21] : memref<8x8xi32, #tpu.memory_space<smem>>
    %51 = arith.index_cast %50 : i32 to index
    %c0_22 = arith.constant 0 : index
    %52 = vector.load %arg3[%51, %c0_22] : memref<64x128xf32, #tpu.memory_space<vmem>>, vector<1x128xf32>
    %c1_i32_23 = arith.constant 1 : i32
    %53 = arith.addi %0, %c1_i32_23 : i32
    %54 = arith.index_cast %53 : i32 to index
    %c1_24 = arith.constant 1 : index
    %55 = memref.load %arg1[%54, %c1_24] : memref<8x8xi32, #tpu.memory_space<smem>>
    %56 = arith.index_cast %55 : i32 to index
    %c0_25 = arith.constant 0 : index
    %57 = vector.load %arg3[%56, %c0_25] : memref<64x128xf32, #tpu.memory_space<vmem>>, vector<1x128xf32>
    %c1_i32_26 = arith.constant 1 : i32
    %58 = arith.addi %0, %c1_i32_26 : i32
    %59 = arith.index_cast %58 : i32 to index
    %c2_27 = arith.constant 2 : index
    %60 = memref.load %arg1[%59, %c2_27] : memref<8x8xi32, #tpu.memory_space<smem>>
    %61 = arith.index_cast %60 : i32 to index
    %c0_28 = arith.constant 0 : index
    %62 = vector.load %arg3[%61, %c0_28] : memref<64x128xf32, #tpu.memory_space<vmem>>, vector<1x128xf32>
    %c1_i32_29 = arith.constant 1 : i32
    %63 = arith.addi %0, %c1_i32_29 : i32
    %64 = arith.index_cast %63 : i32 to index
    %c3_30 = arith.constant 3 : index
    %65 = memref.load %arg1[%64, %c3_30] : memref<8x8xi32, #tpu.memory_space<smem>>
    %66 = arith.index_cast %65 : i32 to index
    %c0_31 = arith.constant 0 : index
    %67 = vector.load %arg3[%66, %c0_31] : memref<64x128xf32, #tpu.memory_space<vmem>>, vector<1x128xf32>
    %c1_i32_32 = arith.constant 1 : i32
    %68 = arith.addi %0, %c1_i32_32 : i32
    %69 = arith.index_cast %68 : i32 to index
    %c4_33 = arith.constant 4 : index
    %70 = memref.load %arg1[%69, %c4_33] : memref<8x8xi32, #tpu.memory_space<smem>>
    %71 = arith.index_cast %70 : i32 to index
    %c0_34 = arith.constant 0 : index
    %72 = vector.load %arg3[%71, %c0_34] : memref<64x128xf32, #tpu.memory_space<vmem>>, vector<1x128xf32>
    %c1_i32_35 = arith.constant 1 : i32
    %73 = arith.addi %0, %c1_i32_35 : i32
    %74 = arith.index_cast %73 : i32 to index
    %c5_36 = arith.constant 5 : index
    %75 = memref.load %arg1[%74, %c5_36] : memref<8x8xi32, #tpu.memory_space<smem>>
    %76 = arith.index_cast %75 : i32 to index
    %c0_37 = arith.constant 0 : index
    %77 = vector.load %arg3[%76, %c0_37] : memref<64x128xf32, #tpu.memory_space<vmem>>, vector<1x128xf32>
    %c1_i32_38 = arith.constant 1 : i32
    %78 = arith.addi %0, %c1_i32_38 : i32
    %79 = arith.index_cast %78 : i32 to index
    %c6_39 = arith.constant 6 : index
    %80 = memref.load %arg1[%79, %c6_39] : memref<8x8xi32, #tpu.memory_space<smem>>
    %81 = arith.index_cast %80 : i32 to index
    %c0_40 = arith.constant 0 : index
    %82 = vector.load %arg3[%81, %c0_40] : memref<64x128xf32, #tpu.memory_space<vmem>>, vector<1x128xf32>
    %c1_i32_41 = arith.constant 1 : i32
    %83 = arith.addi %0, %c1_i32_41 : i32
    %84 = arith.index_cast %83 : i32 to index
    %c7_42 = arith.constant 7 : index
    %85 = memref.load %arg1[%84, %c7_42] : memref<8x8xi32, #tpu.memory_space<smem>>
    %86 = arith.index_cast %85 : i32 to index
    %c0_43 = arith.constant 0 : index
    %87 = vector.load %arg3[%86, %c0_43] : memref<64x128xf32, #tpu.memory_space<vmem>>, vector<1x128xf32>
    %88 = tpu.concatenate %52, %57, %62, %67, %72, %77, %82, %87 in 0 : vector<1x128xf32>, vector<1x128xf32>, vector<1x128xf32>, vector<1x128xf32>, vector<1x128xf32>, vector<1x128xf32>, vector<1x128xf32>, vector<1x128xf32> -> vector<8x128xf32>
    %c1_44 = arith.constant 1 : index
    %c0_45 = arith.constant 0 : index
    %c0_46 = arith.constant 0 : index
    %89 = vector.load %arg2[%c1_44, %c0_45, %c0_46] : memref<8x8x128xf32, #tpu.memory_space<vmem>>, vector<1x8x128xf32>
    %90 = vector.shape_cast %89 : vector<1x8x128xf32> to vector<8x128xf32>
    %91 = arith.addf %90, %88 : vector<8x128xf32>
    %c1_47 = arith.constant 1 : index
    %c0_48 = arith.constant 0 : index
    %c0_49 = arith.constant 0 : index
    %92 = vector.load %arg4[%c1_47, %c0_48, %c0_49] : memref<8x8x128xf32, #tpu.memory_space<vmem>>, vector<1x8x128xf32>
    %93 = vector.shape_cast %92 : vector<1x8x128xf32> to vector<8x128xf32>
    %94 = vector.shape_cast %91 : vector<8x128xf32> to vector<1x8x128xf32>
    tpu.vector_store %arg4[%c1_47, %c0_48, %c0_49], %94 {strides = array<i32>} : memref<8x8x128xf32, #tpu.memory_space<vmem>>, vector<1x8x128xf32>,
    %c2_i32 = arith.constant 2 : i32
    %95 = arith.addi %0, %c2_i32 : i32
    %96 = arith.index_cast %95 : i32 to index
    %c0_50 = arith.constant 0 : index
    %97 = memref.load %arg1[%96, %c0_50] : memref<8x8xi32, #tpu.memory_space<smem>>
    %98 = arith.index_cast %97 : i32 to index
    %c0_51 = arith.constant 0 : index
    %99 = vector.load %arg3[%98, %c0_51] : memref<64x128xf32, #tpu.memory_space<vmem>>, vector<1x128xf32>
    %c2_i32_52 = arith.constant 2 : i32
    %100 = arith.addi %0, %c2_i32_52 : i32
    %101 = arith.index_cast %100 : i32 to index
    %c1_53 = arith.constant 1 : index
    %102 = memref.load %arg1[%101, %c1_53] : memref<8x8xi32, #tpu.memory_space<smem>>
    %103 = arith.index_cast %102 : i32 to index
    %c0_54 = arith.constant 0 : index
    %104 = vector.load %arg3[%103, %c0_54] : memref<64x128xf32, #tpu.memory_space<vmem>>, vector<1x128xf32>
    %c2_i32_55 = arith.constant 2 : i32
    %105 = arith.addi %0, %c2_i32_55 : i32
    %106 = arith.index_cast %105 : i32 to index
    %c2_56 = arith.constant 2 : index
    %107 = memref.load %arg1[%106, %c2_56] : memref<8x8xi32, #tpu.memory_space<smem>>
    %108 = arith.index_cast %107 : i32 to index
    %c0_57 = arith.constant 0 : index
    %109 = vector.load %arg3[%108, %c0_57] : memref<64x128xf32, #tpu.memory_space<vmem>>, vector<1x128xf32>
    %c2_i32_58 = arith.constant 2 : i32
    %110 = arith.addi %0, %c2_i32_58 : i32
    %111 = arith.index_cast %110 : i32 to index
    %c3_59 = arith.constant 3 : index
    %112 = memref.load %arg1[%111, %c3_59] : memref<8x8xi32, #tpu.memory_space<smem>>
    %113 = arith.index_cast %112 : i32 to index
    %c0_60 = arith.constant 0 : index
    %114 = vector.load %arg3[%113, %c0_60] : memref<64x128xf32, #tpu.memory_space<vmem>>, vector<1x128xf32>
    %c2_i32_61 = arith.constant 2 : i32
    %115 = arith.addi %0, %c2_i32_61 : i32
    %116 = arith.index_cast %115 : i32 to index
    %c4_62 = arith.constant 4 : index
    %117 = memref.load %arg1[%116, %c4_62] : memref<8x8xi32, #tpu.memory_space<smem>>
    %118 = arith.index_cast %117 : i32 to index
    %c0_63 = arith.constant 0 : index
    %119 = vector.load %arg3[%118, %c0_63] : memref<64x128xf32, #tpu.memory_space<vmem>>, vector<1x128xf32>
    %c2_i32_64 = arith.constant 2 : i32
    %120 = arith.addi %0, %c2_i32_64 : i32
    %121 = arith.index_cast %120 : i32 to index
    %c5_65 = arith.constant 5 : index
    %122 = memref.load %arg1[%121, %c5_65] : memref<8x8xi32, #tpu.memory_space<smem>>
    %123 = arith.index_cast %122 : i32 to index
    %c0_66 = arith.constant 0 : index
    %124 = vector.load %arg3[%123, %c0_66] : memref<64x128xf32, #tpu.memory_space<vmem>>, vector<1x128xf32>
    %c2_i32_67 = arith.constant 2 : i32
    %125 = arith.addi %0, %c2_i32_67 : i32
    %126 = arith.index_cast %125 : i32 to index
    %c6_68 = arith.constant 6 : index
    %127 = memref.load %arg1[%126, %c6_68] : memref<8x8xi32, #tpu.memory_space<smem>>
    %128 = arith.index_cast %127 : i32 to index
    %c0_69 = arith.constant 0 : index
    %129 = vector.load %arg3[%128, %c0_69] : memref<64x128xf32, #tpu.memory_space<vmem>>, vector<1x128xf32>
    %c2_i32_70 = arith.constant 2 : i32
    %130 = arith.addi %0, %c2_i32_70 : i32
    %131 = arith.index_cast %130 : i32 to index
    %c7_71 = arith.constant 7 : index
    %132 = memref.load %arg1[%131, %c7_71] : memref<8x8xi32, #tpu.memory_space<smem>>
    %133 = arith.index_cast %132 : i32 to index
    %c0_72 = arith.constant 0 : index
    %134 = vector.load %arg3[%133, %c0_72] : memref<64x128xf32, #tpu.memory_space<vmem>>, vector<1x128xf32>
    %135 = tpu.concatenate %99, %104, %109, %114, %119, %124, %129, %134 in 0 : vector<1x128xf32>, vector<1x128xf32>, vector<1x128xf32>, vector<1x128xf32>, vector<1x128xf32>, vector<1x128xf32>, vector<1x128xf32>, vector<1x128xf32> -> vector<8x128xf32>
    %c2_73 = arith.constant 2 : index
    %c0_74 = arith.constant 0 : index
    %c0_75 = arith.constant 0 : index
    %136 = vector.load %arg2[%c2_73, %c0_74, %c0_75] : memref<8x8x128xf32, #tpu.memory_space<vmem>>, vector<1x8x128xf32>
    %137 = vector.shape_cast %136 : vector<1x8x128xf32> to vector<8x128xf32>
    %138 = arith.addf %137, %135 : vector<8x128xf32>
    %c2_76 = arith.constant 2 : index
    %c0_77 = arith.constant 0 : index
    %c0_78 = arith.constant 0 : index
    %139 = vector.load %arg4[%c2_76, %c0_77, %c0_78] : memref<8x8x128xf32, #tpu.memory_space<vmem>>, vector<1x8x128xf32>
    %140 = vector.shape_cast %139 : vector<1x8x128xf32> to vector<8x128xf32>
    %141 = vector.shape_cast %138 : vector<8x128xf32> to vector<1x8x128xf32>
    tpu.vector_store %arg4[%c2_76, %c0_77, %c0_78], %141 {strides = array<i32>} : memref<8x8x128xf32, #tpu.memory_space<vmem>>, vector<1x8x128xf32>,
    %c3_i32 = arith.constant 3 : i32
    %142 = arith.addi %0, %c3_i32 : i32
    %143 = arith.index_cast %142 : i32 to index
    %c0_79 = arith.constant 0 : index
    %144 = memref.load %arg1[%143, %c0_79] : memref<8x8xi32, #tpu.memory_space<smem>>
    %145 = arith.index_cast %144 : i32 to index
    %c0_80 = arith.constant 0 : index
    %146 = vector.load %arg3[%145, %c0_80] : memref<64x128xf32, #tpu.memory_space<vmem>>, vector<1x128xf32>
    %c3_i32_81 = arith.constant 3 : i32
    %147 = arith.addi %0, %c3_i32_81 : i32
    %148 = arith.index_cast %147 : i32 to index
    %c1_82 = arith.constant 1 : index
    %149 = memref.load %arg1[%148, %c1_82] : memref<8x8xi32, #tpu.memory_space<smem>>
    %150 = arith.index_cast %149 : i32 to index
    %c0_83 = arith.constant 0 : index
    %151 = vector.load %arg3[%150, %c0_83] : memref<64x128xf32, #tpu.memory_space<vmem>>, vector<1x128xf32>
    %c3_i32_84 = arith.constant 3 : i32
    %152 = arith.addi %0, %c3_i32_84 : i32
    %153 = arith.index_cast %152 : i32 to index
    %c2_85 = arith.constant 2 : index
    %154 = memref.load %arg1[%153, %c2_85] : memref<8x8xi32, #tpu.memory_space<smem>>
    %155 = arith.index_cast %154 : i32 to index
    %c0_86 = arith.constant 0 : index
    %156 = vector.load %arg3[%155, %c0_86] : memref<64x128xf32, #tpu.memory_space<vmem>>, vector<1x128xf32>
    %c3_i32_87 = arith.constant 3 : i32
    %157 = arith.addi %0, %c3_i32_87 : i32
    %158 = arith.index_cast %157 : i32 to index
    %c3_88 = arith.constant 3 : index
    %159 = memref.load %arg1[%158, %c3_88] : memref<8x8xi32, #tpu.memory_space<smem>>
    %160 = arith.index_cast %159 : i32 to index
    %c0_89 = arith.constant 0 : index
    %161 = vector.load %arg3[%160, %c0_89] : memref<64x128xf32, #tpu.memory_space<vmem>>, vector<1x128xf32>
    %c3_i32_90 = arith.constant 3 : i32
    %162 = arith.addi %0, %c3_i32_90 : i32
    %163 = arith.index_cast %162 : i32 to index
    %c4_91 = arith.constant 4 : index
    %164 = memref.load %arg1[%163, %c4_91] : memref<8x8xi32, #tpu.memory_space<smem>>
    %165 = arith.index_cast %164 : i32 to index
    %c0_92 = arith.constant 0 : index
    %166 = vector.load %arg3[%165, %c0_92] : memref<64x128xf32, #tpu.memory_space<vmem>>, vector<1x128xf32>
    %c3_i32_93 = arith.constant 3 : i32
    %167 = arith.addi %0, %c3_i32_93 : i32
    %168 = arith.index_cast %167 : i32 to index
    %c5_94 = arith.constant 5 : index
    %169 = memref.load %arg1[%168, %c5_94] : memref<8x8xi32, #tpu.memory_space<smem>>
    %170 = arith.index_cast %169 : i32 to index
    %c0_95 = arith.constant 0 : index
    %171 = vector.load %arg3[%170, %c0_95] : memref<64x128xf32, #tpu.memory_space<vmem>>, vector<1x128xf32>
    %c3_i32_96 = arith.constant 3 : i32
    %172 = arith.addi %0, %c3_i32_96 : i32
    %173 = arith.index_cast %172 : i32 to index
    %c6_97 = arith.constant 6 : index
    %174 = memref.load %arg1[%173, %c6_97] : memref<8x8xi32, #tpu.memory_space<smem>>
    %175 = arith.index_cast %174 : i32 to index
    %c0_98 = arith.constant 0 : index
    %176 = vector.load %arg3[%175, %c0_98] : memref<64x128xf32, #tpu.memory_space<vmem>>, vector<1x128xf32>
    %c3_i32_99 = arith.constant 3 : i32
    %177 = arith.addi %0, %c3_i32_99 : i32
    %178 = arith.index_cast %177 : i32 to index
    %c7_100 = arith.constant 7 : index
    %179 = memref.load %arg1[%178, %c7_100] : memref<8x8xi32, #tpu.memory_space<smem>>
    %180 = arith.index_cast %179 : i32 to index
    %c0_101 = arith.constant 0 : index
    %181 = vector.load %arg3[%180, %c0_101] : memref<64x128xf32, #tpu.memory_space<vmem>>, vector<1x128xf32>
    %182 = tpu.concatenate %146, %151, %156, %161, %166, %171, %176, %181 in 0 : vector<1x128xf32>, vector<1x128xf32>, vector<1x128xf32>, vector<1x128xf32>, vector<1x128xf32>, vector<1x128xf32>, vector<1x128xf32>, vector<1x128xf32> -> vector<8x128xf32>
    %c3_102 = arith.constant 3 : index
    %c0_103 = arith.constant 0 : index
    %c0_104 = arith.constant 0 : index
    %183 = vector.load %arg2[%c3_102, %c0_103, %c0_104] : memref<8x8x128xf32, #tpu.memory_space<vmem>>, vector<1x8x128xf32>
    %184 = vector.shape_cast %183 : vector<1x8x128xf32> to vector<8x128xf32>
    %185 = arith.addf %184, %182 : vector<8x128xf32>
    %c3_105 = arith.constant 3 : index
    %c0_106 = arith.constant 0 : index
    %c0_107 = arith.constant 0 : index
    %186 = vector.load %arg4[%c3_105, %c0_106, %c0_107] : memref<8x8x128xf32, #tpu.memory_space<vmem>>, vector<1x8x128xf32>
    %187 = vector.shape_cast %186 : vector<1x8x128xf32> to vector<8x128xf32>
    %188 = vector.shape_cast %185 : vector<8x128xf32> to vector<1x8x128xf32>
    tpu.vector_store %arg4[%c3_105, %c0_106, %c0_107], %188 {strides = array<i32>} : memref<8x8x128xf32, #tpu.memory_space<vmem>>, vector<1x8x128xf32>,
    %c4_i32 = arith.constant 4 : i32
    %189 = arith.addi %0, %c4_i32 : i32
    %190 = arith.index_cast %189 : i32 to index
    %c0_108 = arith.constant 0 : index
    %191 = memref.load %arg1[%190, %c0_108] : memref<8x8xi32, #tpu.memory_space<smem>>
    %192 = arith.index_cast %191 : i32 to index
    %c0_109 = arith.constant 0 : index
    %193 = vector.load %arg3[%192, %c0_109] : memref<64x128xf32, #tpu.memory_space<vmem>>, vector<1x128xf32>
    %c4_i32_110 = arith.constant 4 : i32
    %194 = arith.addi %0, %c4_i32_110 : i32
    %195 = arith.index_cast %194 : i32 to index
    %c1_111 = arith.constant 1 : index
    %196 = memref.load %arg1[%195, %c1_111] : memref<8x8xi32, #tpu.memory_space<smem>>
    %197 = arith.index_cast %196 : i32 to index
    %c0_112 = arith.constant 0 : index
    %198 = vector.load %arg3[%197, %c0_112] : memref<64x128xf32, #tpu.memory_space<vmem>>, vector<1x128xf32>
    %c4_i32_113 = arith.constant 4 : i32
    %199 = arith.addi %0, %c4_i32_113 : i32
    %200 = arith.index_cast %199 : i32 to index
    %c2_114 = arith.constant 2 : index
    %201 = memref.load %arg1[%200, %c2_114] : memref<8x8xi32, #tpu.memory_space<smem>>
    %202 = arith.index_cast %201 : i32 to index
    %c0_115 = arith.constant 0 : index
    %203 = vector.load %arg3[%202, %c0_115] : memref<64x128xf32, #tpu.memory_space<vmem>>, vector<1x128xf32>
    %c4_i32_116 = arith.constant 4 : i32
    %204 = arith.addi %0, %c4_i32_116 : i32
    %205 = arith.index_cast %204 : i32 to index
    %c3_117 = arith.constant 3 : index
    %206 = memref.load %arg1[%205, %c3_117] : memref<8x8xi32, #tpu.memory_space<smem>>
    %207 = arith.index_cast %206 : i32 to index
    %c0_118 = arith.constant 0 : index
    %208 = vector.load %arg3[%207, %c0_118] : memref<64x128xf32, #tpu.memory_space<vmem>>, vector<1x128xf32>
    %c4_i32_119 = arith.constant 4 : i32
    %209 = arith.addi %0, %c4_i32_119 : i32
    %210 = arith.index_cast %209 : i32 to index
    %c4_120 = arith.constant 4 : index
    %211 = memref.load %arg1[%210, %c4_120] : memref<8x8xi32, #tpu.memory_space<smem>>
    %212 = arith.index_cast %211 : i32 to index
    %c0_121 = arith.constant 0 : index
    %213 = vector.load %arg3[%212, %c0_121] : memref<64x128xf32, #tpu.memory_space<vmem>>, vector<1x128xf32>
    %c4_i32_122 = arith.constant 4 : i32
    %214 = arith.addi %0, %c4_i32_122 : i32
    %215 = arith.index_cast %214 : i32 to index
    %c5_123 = arith.constant 5 : index
    %216 = memref.load %arg1[%215, %c5_123] : memref<8x8xi32, #tpu.memory_space<smem>>
    %217 = arith.index_cast %216 : i32 to index
    %c0_124 = arith.constant 0 : index
    %218 = vector.load %arg3[%217, %c0_124] : memref<64x128xf32, #tpu.memory_space<vmem>>, vector<1x128xf32>
    %c4_i32_125 = arith.constant 4 : i32
    %219 = arith.addi %0, %c4_i32_125 : i32
    %220 = arith.index_cast %219 : i32 to index
    %c6_126 = arith.constant 6 : index
    %221 = memref.load %arg1[%220, %c6_126] : memref<8x8xi32, #tpu.memory_space<smem>>
    %222 = arith.index_cast %221 : i32 to index
    %c0_127 = arith.constant 0 : index
    %223 = vector.load %arg3[%222, %c0_127] : memref<64x128xf32, #tpu.memory_space<vmem>>, vector<1x128xf32>
    %c4_i32_128 = arith.constant 4 : i32
    %224 = arith.addi %0, %c4_i32_128 : i32
    %225 = arith.index_cast %224 : i32 to index
    %c7_129 = arith.constant 7 : index
    %226 = memref.load %arg1[%225, %c7_129] : memref<8x8xi32, #tpu.memory_space<smem>>
    %227 = arith.index_cast %226 : i32 to index
    %c0_130 = arith.constant 0 : index
    %228 = vector.load %arg3[%227, %c0_130] : memref<64x128xf32, #tpu.memory_space<vmem>>, vector<1x128xf32>
    %229 = tpu.concatenate %193, %198, %203, %208, %213, %218, %223, %228 in 0 : vector<1x128xf32>, vector<1x128xf32>, vector<1x128xf32>, vector<1x128xf32>, vector<1x128xf32>, vector<1x128xf32>, vector<1x128xf32>, vector<1x128xf32> -> vector<8x128xf32>
    %c4_131 = arith.constant 4 : index
    %c0_132 = arith.constant 0 : index
    %c0_133 = arith.constant 0 : index
    %230 = vector.load %arg2[%c4_131, %c0_132, %c0_133] : memref<8x8x128xf32, #tpu.memory_space<vmem>>, vector<1x8x128xf32>
    %231 = vector.shape_cast %230 : vector<1x8x128xf32> to vector<8x128xf32>
    %232 = arith.addf %231, %229 : vector<8x128xf32>
    %c4_134 = arith.constant 4 : index
    %c0_135 = arith.constant 0 : index
    %c0_136 = arith.constant 0 : index
    %233 = vector.load %arg4[%c4_134, %c0_135, %c0_136] : memref<8x8x128xf32, #tpu.memory_space<vmem>>, vector<1x8x128xf32>
    %234 = vector.shape_cast %233 : vector<1x8x128xf32> to vector<8x128xf32>
    %235 = vector.shape_cast %232 : vector<8x128xf32> to vector<1x8x128xf32>
    tpu.vector_store %arg4[%c4_134, %c0_135, %c0_136], %235 {strides = array<i32>} : memref<8x8x128xf32, #tpu.memory_space<vmem>>, vector<1x8x128xf32>,
    %c5_i32 = arith.constant 5 : i32
    %236 = arith.addi %0, %c5_i32 : i32
    %237 = arith.index_cast %236 : i32 to index
    %c0_137 = arith.constant 0 : index
    %238 = memref.load %arg1[%237, %c0_137] : memref<8x8xi32, #tpu.memory_space<smem>>
    %239 = arith.index_cast %238 : i32 to index
    %c0_138 = arith.constant 0 : index
    %240 = vector.load %arg3[%239, %c0_138] : memref<64x128xf32, #tpu.memory_space<vmem>>, vector<1x128xf32>
    %c5_i32_139 = arith.constant 5 : i32
    %241 = arith.addi %0, %c5_i32_139 : i32
    %242 = arith.index_cast %241 : i32 to index
    %c1_140 = arith.constant 1 : index
    %243 = memref.load %arg1[%242, %c1_140] : memref<8x8xi32, #tpu.memory_space<smem>>
    %244 = arith.index_cast %243 : i32 to index
    %c0_141 = arith.constant 0 : index
    %245 = vector.load %arg3[%244, %c0_141] : memref<64x128xf32, #tpu.memory_space<vmem>>, vector<1x128xf32>
    %c5_i32_142 = arith.constant 5 : i32
    %246 = arith.addi %0, %c5_i32_142 : i32
    %247 = arith.index_cast %246 : i32 to index
    %c2_143 = arith.constant 2 : index
    %248 = memref.load %arg1[%247, %c2_143] : memref<8x8xi32, #tpu.memory_space<smem>>
    %249 = arith.index_cast %248 : i32 to index
    %c0_144 = arith.constant 0 : index
    %250 = vector.load %arg3[%249, %c0_144] : memref<64x128xf32, #tpu.memory_space<vmem>>, vector<1x128xf32>
    %c5_i32_145 = arith.constant 5 : i32
    %251 = arith.addi %0, %c5_i32_145 : i32
    %252 = arith.index_cast %251 : i32 to index
    %c3_146 = arith.constant 3 : index
    %253 = memref.load %arg1[%252, %c3_146] : memref<8x8xi32, #tpu.memory_space<smem>>
    %254 = arith.index_cast %253 : i32 to index
    %c0_147 = arith.constant 0 : index
    %255 = vector.load %arg3[%254, %c0_147] : memref<64x128xf32, #tpu.memory_space<vmem>>, vector<1x128xf32>
    %c5_i32_148 = arith.constant 5 : i32
    %256 = arith.addi %0, %c5_i32_148 : i32
    %257 = arith.index_cast %256 : i32 to index
    %c4_149 = arith.constant 4 : index
    %258 = memref.load %arg1[%257, %c4_149] : memref<8x8xi32, #tpu.memory_space<smem>>
    %259 = arith.index_cast %258 : i32 to index
    %c0_150 = arith.constant 0 : index
    %260 = vector.load %arg3[%259, %c0_150] : memref<64x128xf32, #tpu.memory_space<vmem>>, vector<1x128xf32>
    %c5_i32_151 = arith.constant 5 : i32
    %261 = arith.addi %0, %c5_i32_151 : i32
    %262 = arith.index_cast %261 : i32 to index
    %c5_152 = arith.constant 5 : index
    %263 = memref.load %arg1[%262, %c5_152] : memref<8x8xi32, #tpu.memory_space<smem>>
    %264 = arith.index_cast %263 : i32 to index
    %c0_153 = arith.constant 0 : index
    %265 = vector.load %arg3[%264, %c0_153] : memref<64x128xf32, #tpu.memory_space<vmem>>, vector<1x128xf32>
    %c5_i32_154 = arith.constant 5 : i32
    %266 = arith.addi %0, %c5_i32_154 : i32
    %267 = arith.index_cast %266 : i32 to index
    %c6_155 = arith.constant 6 : index
    %268 = memref.load %arg1[%267, %c6_155] : memref<8x8xi32, #tpu.memory_space<smem>>
    %269 = arith.index_cast %268 : i32 to index
    %c0_156 = arith.constant 0 : index
    %270 = vector.load %arg3[%269, %c0_156] : memref<64x128xf32, #tpu.memory_space<vmem>>, vector<1x128xf32>
    %c5_i32_157 = arith.constant 5 : i32
    %271 = arith.addi %0, %c5_i32_157 : i32
    %272 = arith.index_cast %271 : i32 to index
    %c7_158 = arith.constant 7 : index
    %273 = memref.load %arg1[%272, %c7_158] : memref<8x8xi32, #tpu.memory_space<smem>>
    %274 = arith.index_cast %273 : i32 to index
    %c0_159 = arith.constant 0 : index
    %275 = vector.load %arg3[%274, %c0_159] : memref<64x128xf32, #tpu.memory_space<vmem>>, vector<1x128xf32>
    %276 = tpu.concatenate %240, %245, %250, %255, %260, %265, %270, %275 in 0 : vector<1x128xf32>, vector<1x128xf32>, vector<1x128xf32>, vector<1x128xf32>, vector<1x128xf32>, vector<1x128xf32>, vector<1x128xf32>, vector<1x128xf32> -> vector<8x128xf32>
    %c5_160 = arith.constant 5 : index
    %c0_161 = arith.constant 0 : index
    %c0_162 = arith.constant 0 : index
    %277 = vector.load %arg2[%c5_160, %c0_161, %c0_162] : memref<8x8x128xf32, #tpu.memory_space<vmem>>, vector<1x8x128xf32>
    %278 = vector.shape_cast %277 : vector<1x8x128xf32> to vector<8x128xf32>
    %279 = arith.addf %278, %276 : vector<8x128xf32>
    %c5_163 = arith.constant 5 : index
    %c0_164 = arith.constant 0 : index
    %c0_165 = arith.constant 0 : index
    %280 = vector.load %arg4[%c5_163, %c0_164, %c0_165] : memref<8x8x128xf32, #tpu.memory_space<vmem>>, vector<1x8x128xf32>
    %281 = vector.shape_cast %280 : vector<1x8x128xf32> to vector<8x128xf32>
    %282 = vector.shape_cast %279 : vector<8x128xf32> to vector<1x8x128xf32>
    tpu.vector_store %arg4[%c5_163, %c0_164, %c0_165], %282 {strides = array<i32>} : memref<8x8x128xf32, #tpu.memory_space<vmem>>, vector<1x8x128xf32>,
    %c6_i32 = arith.constant 6 : i32
    %283 = arith.addi %0, %c6_i32 : i32
    %284 = arith.index_cast %283 : i32 to index
    %c0_166 = arith.constant 0 : index
    %285 = memref.load %arg1[%284, %c0_166] : memref<8x8xi32, #tpu.memory_space<smem>>
    %286 = arith.index_cast %285 : i32 to index
    %c0_167 = arith.constant 0 : index
    %287 = vector.load %arg3[%286, %c0_167] : memref<64x128xf32, #tpu.memory_space<vmem>>, vector<1x128xf32>
    %c6_i32_168 = arith.constant 6 : i32
    %288 = arith.addi %0, %c6_i32_168 : i32
    %289 = arith.index_cast %288 : i32 to index
    %c1_169 = arith.constant 1 : index
    %290 = memref.load %arg1[%289, %c1_169] : memref<8x8xi32, #tpu.memory_space<smem>>
    %291 = arith.index_cast %290 : i32 to index
    %c0_170 = arith.constant 0 : index
    %292 = vector.load %arg3[%291, %c0_170] : memref<64x128xf32, #tpu.memory_space<vmem>>, vector<1x128xf32>
    %c6_i32_171 = arith.constant 6 : i32
    %293 = arith.addi %0, %c6_i32_171 : i32
    %294 = arith.index_cast %293 : i32 to index
    %c2_172 = arith.constant 2 : index
    %295 = memref.load %arg1[%294, %c2_172] : memref<8x8xi32, #tpu.memory_space<smem>>
    %296 = arith.index_cast %295 : i32 to index
    %c0_173 = arith.constant 0 : index
    %297 = vector.load %arg3[%296, %c0_173] : memref<64x128xf32, #tpu.memory_space<vmem>>, vector<1x128xf32>
    %c6_i32_174 = arith.constant 6 : i32
    %298 = arith.addi %0, %c6_i32_174 : i32
    %299 = arith.index_cast %298 : i32 to index
    %c3_175 = arith.constant 3 : index
    %300 = memref.load %arg1[%299, %c3_175] : memref<8x8xi32, #tpu.memory_space<smem>>
    %301 = arith.index_cast %300 : i32 to index
    %c0_176 = arith.constant 0 : index
    %302 = vector.load %arg3[%301, %c0_176] : memref<64x128xf32, #tpu.memory_space<vmem>>, vector<1x128xf32>
    %c6_i32_177 = arith.constant 6 : i32
    %303 = arith.addi %0, %c6_i32_177 : i32
    %304 = arith.index_cast %303 : i32 to index
    %c4_178 = arith.constant 4 : index
    %305 = memref.load %arg1[%304, %c4_178] : memref<8x8xi32, #tpu.memory_space<smem>>
    %306 = arith.index_cast %305 : i32 to index
    %c0_179 = arith.constant 0 : index
    %307 = vector.load %arg3[%306, %c0_179] : memref<64x128xf32, #tpu.memory_space<vmem>>, vector<1x128xf32>
    %c6_i32_180 = arith.constant 6 : i32
    %308 = arith.addi %0, %c6_i32_180 : i32
    %309 = arith.index_cast %308 : i32 to index
    %c5_181 = arith.constant 5 : index
    %310 = memref.load %arg1[%309, %c5_181] : memref<8x8xi32, #tpu.memory_space<smem>>
    %311 = arith.index_cast %310 : i32 to index
    %c0_182 = arith.constant 0 : index
    %312 = vector.load %arg3[%311, %c0_182] : memref<64x128xf32, #tpu.memory_space<vmem>>, vector<1x128xf32>
    %c6_i32_183 = arith.constant 6 : i32
    %313 = arith.addi %0, %c6_i32_183 : i32
    %314 = arith.index_cast %313 : i32 to index
    %c6_184 = arith.constant 6 : index
    %315 = memref.load %arg1[%314, %c6_184] : memref<8x8xi32, #tpu.memory_space<smem>>
    %316 = arith.index_cast %315 : i32 to index
    %c0_185 = arith.constant 0 : index
    %317 = vector.load %arg3[%316, %c0_185] : memref<64x128xf32, #tpu.memory_space<vmem>>, vector<1x128xf32>
    %c6_i32_186 = arith.constant 6 : i32
    %318 = arith.addi %0, %c6_i32_186 : i32
    %319 = arith.index_cast %318 : i32 to index
    %c7_187 = arith.constant 7 : index
    %320 = memref.load %arg1[%319, %c7_187] : memref<8x8xi32, #tpu.memory_space<smem>>
    %321 = arith.index_cast %320 : i32 to index
    %c0_188 = arith.constant 0 : index
    %322 = vector.load %arg3[%321, %c0_188] : memref<64x128xf32, #tpu.memory_space<vmem>>, vector<1x128xf32>
    %323 = tpu.concatenate %287, %292, %297, %302, %307, %312, %317, %322 in 0 : vector<1x128xf32>, vector<1x128xf32>, vector<1x128xf32>, vector<1x128xf32>, vector<1x128xf32>, vector<1x128xf32>, vector<1x128xf32>, vector<1x128xf32> -> vector<8x128xf32>
    %c6_189 = arith.constant 6 : index
    %c0_190 = arith.constant 0 : index
    %c0_191 = arith.constant 0 : index
    %324 = vector.load %arg2[%c6_189, %c0_190, %c0_191] : memref<8x8x128xf32, #tpu.memory_space<vmem>>, vector<1x8x128xf32>
    %325 = vector.shape_cast %324 : vector<1x8x128xf32> to vector<8x128xf32>
    %326 = arith.addf %325, %323 : vector<8x128xf32>
    %c6_192 = arith.constant 6 : index
    %c0_193 = arith.constant 0 : index
    %c0_194 = arith.constant 0 : index
    %327 = vector.load %arg4[%c6_192, %c0_193, %c0_194] : memref<8x8x128xf32, #tpu.memory_space<vmem>>, vector<1x8x128xf32>
    %328 = vector.shape_cast %327 : vector<1x8x128xf32> to vector<8x128xf32>
    %329 = vector.shape_cast %326 : vector<8x128xf32> to vector<1x8x128xf32>
    tpu.vector_store %arg4[%c6_192, %c0_193, %c0_194], %329 {strides = array<i32>} : memref<8x8x128xf32, #tpu.memory_space<vmem>>, vector<1x8x128xf32>,
    %c7_i32 = arith.constant 7 : i32
    %330 = arith.addi %0, %c7_i32 : i32
    %331 = arith.index_cast %330 : i32 to index
    %c0_195 = arith.constant 0 : index
    %332 = memref.load %arg1[%331, %c0_195] : memref<8x8xi32, #tpu.memory_space<smem>>
    %333 = arith.index_cast %332 : i32 to index
    %c0_196 = arith.constant 0 : index
    %334 = vector.load %arg3[%333, %c0_196] : memref<64x128xf32, #tpu.memory_space<vmem>>, vector<1x128xf32>
    %c7_i32_197 = arith.constant 7 : i32
    %335 = arith.addi %0, %c7_i32_197 : i32
    %336 = arith.index_cast %335 : i32 to index
    %c1_198 = arith.constant 1 : index
    %337 = memref.load %arg1[%336, %c1_198] : memref<8x8xi32, #tpu.memory_space<smem>>
    %338 = arith.index_cast %337 : i32 to index
    %c0_199 = arith.constant 0 : index
    %339 = vector.load %arg3[%338, %c0_199] : memref<64x128xf32, #tpu.memory_space<vmem>>, vector<1x128xf32>
    %c7_i32_200 = arith.constant 7 : i32
    %340 = arith.addi %0, %c7_i32_200 : i32
    %341 = arith.index_cast %340 : i32 to index
    %c2_201 = arith.constant 2 : index
    %342 = memref.load %arg1[%341, %c2_201] : memref<8x8xi32, #tpu.memory_space<smem>>
    %343 = arith.index_cast %342 : i32 to index
    %c0_202 = arith.constant 0 : index
    %344 = vector.load %arg3[%343, %c0_202] : memref<64x128xf32, #tpu.memory_space<vmem>>, vector<1x128xf32>
    %c7_i32_203 = arith.constant 7 : i32
    %345 = arith.addi %0, %c7_i32_203 : i32
    %346 = arith.index_cast %345 : i32 to index
    %c3_204 = arith.constant 3 : index
    %347 = memref.load %arg1[%346, %c3_204] : memref<8x8xi32, #tpu.memory_space<smem>>
    %348 = arith.index_cast %347 : i32 to index
    %c0_205 = arith.constant 0 : index
    %349 = vector.load %arg3[%348, %c0_205] : memref<64x128xf32, #tpu.memory_space<vmem>>, vector<1x128xf32>
    %c7_i32_206 = arith.constant 7 : i32
    %350 = arith.addi %0, %c7_i32_206 : i32
    %351 = arith.index_cast %350 : i32 to index
    %c4_207 = arith.constant 4 : index
    %352 = memref.load %arg1[%351, %c4_207] : memref<8x8xi32, #tpu.memory_space<smem>>
    %353 = arith.index_cast %352 : i32 to index
    %c0_208 = arith.constant 0 : index
    %354 = vector.load %arg3[%353, %c0_208] : memref<64x128xf32, #tpu.memory_space<vmem>>, vector<1x128xf32>
    %c7_i32_209 = arith.constant 7 : i32
    %355 = arith.addi %0, %c7_i32_209 : i32
    %356 = arith.index_cast %355 : i32 to index
    %c5_210 = arith.constant 5 : index
    %357 = memref.load %arg1[%356, %c5_210] : memref<8x8xi32, #tpu.memory_space<smem>>
    %358 = arith.index_cast %357 : i32 to index
    %c0_211 = arith.constant 0 : index
    %359 = vector.load %arg3[%358, %c0_211] : memref<64x128xf32, #tpu.memory_space<vmem>>, vector<1x128xf32>
    %c7_i32_212 = arith.constant 7 : i32
    %360 = arith.addi %0, %c7_i32_212 : i32
    %361 = arith.index_cast %360 : i32 to index
    %c6_213 = arith.constant 6 : index
    %362 = memref.load %arg1[%361, %c6_213] : memref<8x8xi32, #tpu.memory_space<smem>>
    %363 = arith.index_cast %362 : i32 to index
    %c0_214 = arith.constant 0 : index
    %364 = vector.load %arg3[%363, %c0_214] : memref<64x128xf32, #tpu.memory_space<vmem>>, vector<1x128xf32>
    %c7_i32_215 = arith.constant 7 : i32
    %365 = arith.addi %0, %c7_i32_215 : i32
    %366 = arith.index_cast %365 : i32 to index
    %c7_216 = arith.constant 7 : index
    %367 = memref.load %arg1[%366, %c7_216] : memref<8x8xi32, #tpu.memory_space<smem>>
    %368 = arith.index_cast %367 : i32 to index
    %c0_217 = arith.constant 0 : index
    %369 = vector.load %arg3[%368, %c0_217] : memref<64x128xf32, #tpu.memory_space<vmem>>, vector<1x128xf32>
    %370 = tpu.concatenate %334, %339, %344, %349, %354, %359, %364, %369 in 0 : vector<1x128xf32>, vector<1x128xf32>, vector<1x128xf32>, vector<1x128xf32>, vector<1x128xf32>, vector<1x128xf32>, vector<1x128xf32>, vector<1x128xf32> -> vector<8x128xf32>
    %c7_218 = arith.constant 7 : index
    %c0_219 = arith.constant 0 : index
    %c0_220 = arith.constant 0 : index
    %371 = vector.load %arg2[%c7_218, %c0_219, %c0_220] : memref<8x8x128xf32, #tpu.memory_space<vmem>>, vector<1x8x128xf32>
    %372 = vector.shape_cast %371 : vector<1x8x128xf32> to vector<8x128xf32>
    %373 = arith.addf %372, %370 : vector<8x128xf32>
    %c7_221 = arith.constant 7 : index
    %c0_222 = arith.constant 0 : index
    %c0_223 = arith.constant 0 : index
    %374 = vector.load %arg4[%c7_221, %c0_222, %c0_223] : memref<8x8x128xf32, #tpu.memory_space<vmem>>, vector<1x8x128xf32>
    %375 = vector.shape_cast %374 : vector<1x8x128xf32> to vector<8x128xf32>
    %376 = vector.shape_cast %373 : vector<8x128xf32> to vector<1x8x128xf32>
    tpu.vector_store %arg4[%c7_221, %c0_222, %c0_223], %376 {strides = array<i32>} : memref<8x8x128xf32, #tpu.memory_space<vmem>>, vector<1x8x128xf32>,
    return
  }
  func.func @transform_0(%arg0: i32, %arg1: memref<8x8xi32, #tpu.memory_space<smem>>) -> (i32, i32, i32) {
    %c0_i32 = arith.constant 0 : i32
    %c0_i32_0 = arith.constant 0 : i32
    %c0_i32_1 = arith.constant 0 : i32
    return %arg0, %c0_i32, %c0_i32_0 : i32, i32, i32
  }
  func.func @transform_1(%arg0: i32, %arg1: memref<8x8xi32, #tpu.memory_space<smem>>) -> (i32, i32) {
    %c0_i32 = arith.constant 0 : i32
    %c0_i32_0 = arith.constant 0 : i32
    %c0_i32_1 = arith.constant 0 : i32
    return %c0_i32, %c0_i32_0 : i32, i32
  }
  func.func @transform_2(%arg0: i32, %arg1: memref<8x8xi32, #tpu.memory_space<smem>>) -> (i32, i32, i32) {
    %c0_i32 = arith.constant 0 : i32
    %c0_i32_0 = arith.constant 0 : i32
    %c0_i32_1 = arith.constant 0 : i32
    return %arg0, %c0_i32, %c0_i32_0 : i32, i32, i32
  }
}

</mosaic_0001>

<bundles_post_ra>
// kernel: position_encoding.1
= control target key start
LH: loop header
LB: loop body
LE: loop exit
PB: predicated region body
PF: predicated region fallthrough
CT: control target
= control target key end

     0   :  { %s831_s15 = smov [#allocation3]   ;;  %s1102_s0 = inlined_call_operand.vmem [shape: s32[8,8], index: 0, kind: input, shape index: {}]   ;;  %s1103_s1 = inlined_call_operand.hbm [shape: f32[8,8,128], index: 1, kind: input, shape index: {}]   ;;  %s1104_s2 = inlined_call_operand.hbm [shape: f32[64,128], index: 2, kind: input, shape index: {}]   ;;  %s1105_s3 = inlined_call_operand.hbm [shape: f32[8,8,128], index: 3, kind: output, shape index: {}]  }
   0x1   :  { %s9_s14 = sshll.u32 %s1102_s0, 4  ;;  %s10_s14 = int_to_ptr.vmem [resolvable:$true] %s9_s14 }
   0x2   :  { %12 = dma.vmem_to_smem %s10_s14, 128, %s831_s15, [#allocation2] }
   0x3   :  { %823 = dma.done.wait [#allocation2], 128 }
   0x4   :  { %824 = vsyncadd [#allocation2], 4294967168 }
   0x5   :  { %15 = sfence }
   0x6   :  { %16 = vsyncpa [#allocation5], 0 }
   0x7   :  { %17 = vsyncpa [#allocation8], 0 }
   0x8   :  { %18 = vsyncpa [#allocation6], 0  ;;  %s23_s18 = sshll.u32 %s1103_s1, 4  ;;  %s832_s19 = smov [#allocation4]   ;;  %s24_s18 = int_to_ptr.hbm [resolvable:$true] %s23_s18 }
   0x9   :  { %s25_s20 = sshll.u32 %s832_s19, 4  ;;  %s36_s0 = sshll.u32 %s1104_s2, 4  ;;  %s26_s20 = int_to_ptr.vmem [resolvable:$true] %s25_s20  ;;  %s37_s0 = int_to_ptr.hbm [resolvable:$true] %s36_s0 }
   0xa   :  { %s833_s23 = smov 128   ;;  %s834_s24 = smov 8  }
   0xb   :  { %31 = dma.hbm_to_vmem [thread:$0]  %s24_s18, 1024, %s26_s20, [#allocation5], %s833_s23, %s833_s23, %s834_s24  }
   0xc   :  { %s835_s25 = smov [#allocation7]  }
   0xd   :  { %s38_s26 = sshll.u32 %s835_s25, 4  ;;  %s39_s26 = int_to_ptr.vmem [resolvable:$true] %s38_s26 }
   0xe   :  { %44 = dma.hbm_to_vmem [thread:$0]  %s37_s0, 1024, %s39_s26, [#allocation8], %s833_s23, %s833_s23, %s834_s24  }
   0xf   :  { %825 = dma.done.wait [#allocation5], 1024  }
  0x10   :  { %826 = vsyncadd [#allocation5], 4294966272 }
  0x11   :  { %827 = dma.done.wait [#allocation8], 1024  }
  0x12   :  { %828 = vsyncadd [#allocation8], 4294966272  ;;  %s55_s1 = sld [smem:[#allocation3]]  ;;  %vm107_vm0 = vcmask 1040384   ;;  %vm109_vm1 = vcmask 1041408   ;;  %vm111_vm2 = vcmask 1042432  }
  0x13   :  { %s670_s2 = sld [smem:[#allocation3 + $0x1]]  ;;  %vm113_vm3 = vcmask 1043456   ;;  %vm115_vm4 = vcmask 1044480   ;;  %vm117_vm5 = vcmask 1045504   ;;  %vm119_vm6 = vcmask 1046528   ;;  %v121_v15 = vld [vmem:[#allocation4] sm:$0xff] }
  0x14   :  { %s671_s27 = sld [smem:[#allocation3 + $0x2]]  ;;  %v186_v39 = vld [vmem:[#allocation4 + $0x8] sm:$0xff]  ;;  %v252_v63 = vld [vmem:[#allocation4 + $0x10] sm:$0xff] }
  0x15   :  { %s672_s28 = sld [smem:[#allocation3 + $0x3]] }
  0x16   :  { %s673_s29 = sld [smem:[#allocation3 + $0x4]] }
  0x17   :  { %s872_s30 = sld [smem:[#allocation3 + $0x5]] }
  0x18   :  { %s874_s4 = sld [smem:[#allocation3 + $0x6]]  ;;  %s56_s5 = scalar_lea.vmem [#allocation7], %s55_s1 }
  0x19   :  { %v57_v0 = vld [vmem:[%s56_s5] sm:$0x1]  ;;  %s876_s6 = sld [smem:[#allocation3 + $0x7]]  ;;  %s60_s7 = scalar_lea.vmem [#allocation7], %s670_s2 }
  0x1a   :  { %v61_v1 = vld [vmem:[%s60_s7] sm:$0x1]  ;;  %s878_s8 = sld [smem:[#allocation3 + $0x80]]  ;;  %s64_s9 = scalar_lea.vmem [#allocation7], %s671_s27 }
  0x1b   :  { %v65_v2 = vld [vmem:[%s64_s9] sm:$0x1]  ;;  %v87_v3 = vrot.slane %v61_v1, 7  ;;  %s880_s10 = sld [smem:[#allocation3 + $0x81]]  ;;  %s68_s11 = scalar_lea.vmem [#allocation7], %s672_s28 }
  0x1c   :  { %v69_v4 = vld [vmem:[%s68_s11] sm:$0x1]  ;;  %v90_v5 = vrot.slane %v65_v2, 6  ;;  %s882_s12 = sld [smem:[#allocation3 + $0x82]]  ;;  %s72_s13 = scalar_lea.vmem [#allocation7], %s673_s29 }
  0x1d   :  { %v73_v6 = vld [vmem:[%s72_s13] sm:$0x1]  ;;  %v93_v7 = vrot.slane %v69_v4, 5  ;;  %v108_v8 = vsel %vm107_vm0, %v57_v0, %v87_v3  ;;  %s885_s14 = sld [smem:[#allocation3 + $0x83]]  ;;  %s76_s15 = scalar_lea.vmem [#allocation7], %s872_s30 }
  0x1e   :  { %v77_v9 = vld [vmem:[%s76_s15] sm:$0x1]  ;;  %v96_v10 = vrot.slane %v73_v6, 4  ;;  %v110_v11 = vsel %vm109_vm1, %v108_v8, %v90_v5  ;;  %s889_s16 = sld [smem:[#allocation3 + $0x84]]  ;;  %s80_s17 = scalar_lea.vmem [#allocation7], %s874_s4 }
  0x1f   :  { %v81_v12 = vld [vmem:[%s80_s17] sm:$0x1]  ;;  %v99_v13 = vrot.slane %v77_v9, 3  ;;  %v112_v14 = vsel %vm111_vm2, %v110_v11, %v93_v7  ;;  %s893_s18 = sld [smem:[#allocation3 + $0x85]]  ;;  %s84_s19 = scalar_lea.vmem [#allocation7], %s876_s6 }
  0x20   :  { %v85_v16 = vld [vmem:[%s84_s19] sm:$0x1]  ;;  %v102_v17 = vrot.slane %v81_v12, 2  ;;  %v114_v18 = vsel %vm113_vm3, %v112_v14, %v96_v10  ;;  %s897_s20 = sld [smem:[#allocation3 + $0x86]]  ;;  %s127_s21 = scalar_lea.vmem [#allocation7], %s878_s8 }
  0x21   :  { %v105_v19 = vrot.slane %v85_v16, 1  ;;  %v116_v20 = vsel %vm115_vm4, %v114_v18, %v99_v13  ;;  %v128_v21 = vld [vmem:[%s127_s21] sm:$0x1]  ;;  %s901_s22 = sld [smem:[#allocation3 + $0x87]]  ;;  %s131_s0 = scalar_lea.vmem [#allocation7], %s880_s10 }
  0x22   :  { %v118_v22 = vsel %vm117_vm5, %v116_v20, %v102_v17  ;;  %v132_v23 = vld [vmem:[%s131_s0] sm:$0x1]  ;;  %s905_s25 = sld [smem:[#allocation3 + $0x100]]  ;;  %s135_s26 = scalar_lea.vmem [#allocation7], %s882_s12 }
  0x23   :  { %v120_v24 = vsel %vm119_vm6, %v118_v22, %v105_v19  ;;  %v136_v25 = vld [vmem:[%s135_s26] sm:$0x1]  ;;  %v158_v26 = vrot.slane %v132_v23, 7  ;;  %s909_s1 = sld [smem:[#allocation3 + $0x101]]  ;;  %s139_s2 = scalar_lea.vmem [#allocation7], %s885_s14  ;;  %v318_v23 = vld [vmem:[#allocation4 + $0x18] sm:$0xff] }
  0x24   :  { %v122_v27 = vadd.f32 %v121_v15, %v120_v24  ;;  %v140_v28 = vld [vmem:[%s139_s2] sm:$0x1]  ;;  %v161_v29 = vrot.slane %v136_v25, 6  ;;  %s912_s27 = sld [smem:[#allocation3 + $0x102]]  ;;  %s143_s28 = scalar_lea.vmem [#allocation7], %s889_s16 }
  0x25   :  { %v144_v30 = vld [vmem:[%s143_s28] sm:$0x1]  ;;  %v164_v31 = vrot.slane %v140_v28, 5  ;;  %v178_v32 = vsel %vm107_vm0, %v128_v21, %v158_v26  ;;  %s916_s29 = sld [smem:[#allocation3 + $0x103]]  ;;  %s147_s30 = scalar_lea.vmem [#allocation7], %s893_s18 }
  0x26   :  { %123 = vst [vmem:[#allocation9] sm:$0xff] %v122_v27  ;;  %v148_v33 = vld [vmem:[%s147_s30] sm:$0x1]  ;;  %v167_v34 = vrot.slane %v144_v30, 4  ;;  %v179_v35 = vsel %vm109_vm1, %v178_v32, %v161_v29  ;;  %s151_s4 = scalar_lea.vmem [#allocation7], %s897_s20  ;;  %s922_s5 = sld [smem:[#allocation3 + $0x104]] }
  0x27   :  { %v152_v36 = vld [vmem:[%s151_s4] sm:$0x1]  ;;  %v170_v37 = vrot.slane %v148_v33, 3  ;;  %v180_v38 = vsel %vm111_vm2, %v179_v35, %v164_v31  ;;  %s155_s6 = scalar_lea.vmem [#allocation7], %s901_s22  ;;  %s926_s7 = sld [smem:[#allocation3 + $0x105]] }
  0x28   :  { %v156_v40 = vld [vmem:[%s155_s6] sm:$0x1]  ;;  %v173_v41 = vrot.slane %v152_v36, 2  ;;  %v181_v42 = vsel %vm113_vm3, %v180_v38, %v167_v34  ;;  %s193_s8 = scalar_lea.vmem [#allocation7], %s905_s25  ;;  %s930_s9 = sld [smem:[#allocation3 + $0x106]] }
  0x29   :  { %v176_v43 = vrot.slane %v156_v40, 1  ;;  %v182_v44 = vsel %vm115_vm4, %v181_v42, %v170_v37  ;;  %v194_v45 = vld [vmem:[%s193_s8] sm:$0x1]  ;;  %s197_s10 = scalar_lea.vmem [#allocation7], %s909_s1  ;;  %s934_s11 = sld [smem:[#allocation3 + $0x107]] }
  0x2a   :  { %v183_v46 = vsel %vm117_vm5, %v182_v44, %v173_v41  ;;  %v198_v47 = vld [vmem:[%s197_s10] sm:$0x1]  ;;  %s201_s12 = scalar_lea.vmem [#allocation7], %s912_s27  ;;  %s938_s13 = sld [smem:[#allocation3 + $0x180]] }
  0x2b   :  { %v184_v48 = vsel %vm119_vm6, %v183_v46, %v176_v43  ;;  %v202_v49 = vld [vmem:[%s201_s12] sm:$0x1]  ;;  %v224_v50 = vrot.slane %v198_v47, 7  ;;  %s205_s14 = scalar_lea.vmem [#allocation7], %s916_s29  ;;  %s941_s15 = sld [smem:[#allocation3 + $0x181]] }
  0x2c   :  { %v187_v51 = vadd.f32 %v186_v39, %v184_v48  ;;  %v206_v52 = vld [vmem:[%s205_s14] sm:$0x1]  ;;  %v227_v53 = vrot.slane %v202_v49, 6  ;;  %s944_s16 = sld [smem:[#allocation3 + $0x182]]  ;;  %s209_s17 = scalar_lea.vmem [#allocation7], %s922_s5 }
  0x2d   :  { %v230_v54 = vrot.slane %v206_v52, 5  ;;  %v244_v55 = vsel %vm107_vm0, %v194_v45, %v224_v50  ;;  %v210_v56 = vld [vmem:[%s209_s17] sm:$0x1]  ;;  %s948_s18 = sld [smem:[#allocation3 + $0x183]]  ;;  %s213_s19 = scalar_lea.vmem [#allocation7], %s926_s7 }
  0x2e   :  { %189 = vst [vmem:[#allocation9 + $0x8] sm:$0xff] %v187_v51  ;;  %v245_v57 = vsel %vm109_vm1, %v244_v55, %v227_v53  ;;  %v214_v58 = vld [vmem:[%s213_s19] sm:$0x1]  ;;  %v233_v59 = vrot.slane %v210_v56, 4  ;;  %s952_s20 = sld [smem:[#allocation3 + $0x184]]  ;;  %s217_s21 = scalar_lea.vmem [#allocation7], %s930_s9 }
  0x2f   :  { %v246_v60 = vsel %vm111_vm2, %v245_v57, %v230_v54  ;;  %v218_v61 = vld [vmem:[%s217_s21] sm:$0x1]  ;;  %v236_v62 = vrot.slane %v214_v58, 3  ;;  %s955_s22 = sld [smem:[#allocation3 + $0x185]]  ;;  %s221_s0 = scalar_lea.vmem [#allocation7], %s934_s11 }
  0x30   :  { %v222_v0 = vld [vmem:[%s221_s0] sm:$0x1]  ;;  %v239_v1 = vrot.slane %v218_v61, 2  ;;  %v247_v2 = vsel %vm113_vm3, %v246_v60, %v233_v59  ;;  %s959_s25 = sld [smem:[#allocation3 + $0x186]]  ;;  %s259_s26 = scalar_lea.vmem [#allocation7], %s938_s13 }
  0x31   :  { %v242_v3 = vrot.slane %v222_v0, 1  ;;  %v248_v4 = vsel %vm115_vm4, %v247_v2, %v236_v62  ;;  %v260_v5 = vld [vmem:[%s259_s26] sm:$0x1]  ;;  %s963_s1 = sld [smem:[#allocation3 + $0x187]]  ;;  %s263_s2 = scalar_lea.vmem [#allocation7], %s941_s15 }
  0x32   :  { %v249_v6 = vsel %vm117_vm5, %v248_v4, %v239_v1  ;;  %v264_v7 = vld [vmem:[%s263_s2] sm:$0x1]  ;;  %s967_s27 = sld [smem:[#allocation3 + $0x200]]  ;;  %s267_s28 = scalar_lea.vmem [#allocation7], %s944_s16 }
  0x33   :  { %v250_v8 = vsel %vm119_vm6, %v249_v6, %v242_v3  ;;  %v268_v9 = vld [vmem:[%s267_s28] sm:$0x1]  ;;  %v290_v10 = vrot.slane %v264_v7, 7  ;;  %s971_s29 = sld [smem:[#allocation3 + $0x201]]  ;;  %s271_s30 = scalar_lea.vmem [#allocation7], %s948_s18  ;;  %v450_v7 = vld [vmem:[#allocation4 + $0x28] sm:$0xff] }
  0x34   :  { %v253_v11 = vadd.f32 %v252_v63, %v250_v8  ;;  %v272_v12 = vld [vmem:[%s271_s30] sm:$0x1]  ;;  %v293_v13 = vrot.slane %v268_v9, 6  ;;  %s974_s4 = sld [smem:[#allocation3 + $0x202]]  ;;  %s275_s5 = scalar_lea.vmem [#allocation7], %s952_s20 }
  0x35   :  { %v276_v14 = vld [vmem:[%s275_s5] sm:$0x1]  ;;  %v296_v15 = vrot.slane %v272_v12, 5  ;;  %v310_v16 = vsel %vm107_vm0, %v260_v5, %v290_v10  ;;  %s978_s6 = sld [smem:[#allocation3 + $0x203]]  ;;  %s279_s7 = scalar_lea.vmem [#allocation7], %s955_s22 }
  0x36   :  { %255 = vst [vmem:[#allocation9 + $0x10] sm:$0xff] %v253_v11  ;;  %v280_v17 = vld [vmem:[%s279_s7] sm:$0x1]  ;;  %v299_v18 = vrot.slane %v276_v14, 4  ;;  %v311_v19 = vsel %vm109_vm1, %v310_v16, %v293_v13  ;;  %s283_s8 = scalar_lea.vmem [#allocation7], %s959_s25  ;;  %s984_s9 = sld [smem:[#allocation3 + $0x204]] }
  0x37   :  { %v284_v20 = vld [vmem:[%s283_s8] sm:$0x1]  ;;  %v302_v21 = vrot.slane %v280_v17, 3  ;;  %v312_v22 = vsel %vm111_vm2, %v311_v19, %v296_v15  ;;  %s287_s10 = scalar_lea.vmem [#allocation7], %s963_s1  ;;  %s988_s11 = sld [smem:[#allocation3 + $0x205]] }
  0x38   :  { %v288_v24 = vld [vmem:[%s287_s10] sm:$0x1]  ;;  %v305_v25 = vrot.slane %v284_v20, 2  ;;  %v313_v26 = vsel %vm113_vm3, %v312_v22, %v299_v18  ;;  %s325_s12 = scalar_lea.vmem [#allocation7], %s967_s27  ;;  %s992_s13 = sld [smem:[#allocation3 + $0x206]] }
  0x39   :  { %v308_v27 = vrot.slane %v288_v24, 1  ;;  %v314_v28 = vsel %vm115_vm4, %v313_v26, %v302_v21  ;;  %v326_v29 = vld [vmem:[%s325_s12] sm:$0x1]  ;;  %s329_s14 = scalar_lea.vmem [#allocation7], %s971_s29  ;;  %s996_s15 = sld [smem:[#allocation3 + $0x207]] }
  0x3a   :  { %v315_v30 = vsel %vm117_vm5, %v314_v28, %v305_v25  ;;  %v330_v31 = vld [vmem:[%s329_s14] sm:$0x1]  ;;  %s333_s16 = scalar_lea.vmem [#allocation7], %s974_s4  ;;  %s1000_s17 = sld [smem:[#allocation3 + $0x280]] }
  0x3b   :  { %v316_v32 = vsel %vm119_vm6, %v315_v30, %v308_v27  ;;  %v334_v33 = vld [vmem:[%s333_s16] sm:$0x1]  ;;  %v356_v34 = vrot.slane %v330_v31, 7  ;;  %s337_s18 = scalar_lea.vmem [#allocation7], %s978_s6  ;;  %s1003_s19 = sld [smem:[#allocation3 + $0x281]] }
  0x3c   :  { %v319_v35 = vadd.f32 %v318_v23, %v316_v32  ;;  %v338_v36 = vld [vmem:[%s337_s18] sm:$0x1]  ;;  %v359_v37 = vrot.slane %v334_v33, 6  ;;  %s1006_s20 = sld [smem:[#allocation3 + $0x282]]  ;;  %s341_s21 = scalar_lea.vmem [#allocation7], %s984_s9 }
  0x3d   :  { %v362_v38 = vrot.slane %v338_v36, 5  ;;  %v376_v39 = vsel %vm107_vm0, %v326_v29, %v356_v34  ;;  %v342_v40 = vld [vmem:[%s341_s21] sm:$0x1]  ;;  %s1010_s22 = sld [smem:[#allocation3 + $0x283]]  ;;  %s345_s0 = scalar_lea.vmem [#allocation7], %s988_s11  ;;  %v516_v36 = vld [vmem:[#allocation4 + $0x30] sm:$0xff] }
  0x3e   :  { %321 = vst [vmem:[#allocation9 + $0x18] sm:$0xff] %v319_v35  ;;  %v377_v41 = vsel %vm109_vm1, %v376_v39, %v359_v37  ;;  %v346_v42 = vld [vmem:[%s345_s0] sm:$0x1]  ;;  %v365_v43 = vrot.slane %v342_v40, 4  ;;  %s1014_s25 = sld [smem:[#allocation3 + $0x284]]  ;;  %s349_s26 = scalar_lea.vmem [#allocation7], %s992_s13 }
  0x3f   :  { %v378_v44 = vsel %vm111_vm2, %v377_v41, %v362_v38  ;;  %v350_v45 = vld [vmem:[%s349_s26] sm:$0x1]  ;;  %v368_v46 = vrot.slane %v346_v42, 3  ;;  %s1017_s1 = sld [smem:[#allocation3 + $0x285]]  ;;  %s353_s2 = scalar_lea.vmem [#allocation7], %s996_s15 }
  0x40   :  { %v384_v47 = vld [vmem:[#allocation4 + $0x20] sm:$0xff]  ;;  %v371_v49 = vrot.slane %v350_v45, 2  ;;  %v379_v50 = vsel %vm113_vm3, %v378_v44, %v365_v43  ;;  %s1021_s27 = sld [smem:[#allocation3 + $0x286]]  ;;  %s391_s28 = scalar_lea.vmem [#allocation7], %s1000_s17 }
  0x41   :  { %v354_v48 = vld [vmem:[%s353_s2] sm:$0x1]  ;;  %v380_v52 = vsel %vm115_vm4, %v379_v50, %v368_v46  ;;  %s1025_s29 = sld [smem:[#allocation3 + $0x287]]  ;;  %s395_s30 = scalar_lea.vmem [#allocation7], %s1003_s19 }
  0x42   :  { %v374_v51 = vrot.slane %v354_v48, 1  ;;  %v392_v53 = vld [vmem:[%s391_s28] sm:$0x1]  ;;  %v381_v54 = vsel %vm117_vm5, %v380_v52, %v371_v49  ;;  %s1029_s4 = sld [smem:[#allocation3 + $0x300]]  ;;  %s399_s5 = scalar_lea.vmem [#allocation7], %s1006_s20 }
  0x43   :  { %v396_v55 = vld [vmem:[%s395_s30] sm:$0x1]  ;;  %s1033_s6 = sld [smem:[#allocation3 + $0x301]]  ;;  %s403_s7 = scalar_lea.vmem [#allocation7], %s1010_s22 }
  0x44   :  { %v382_v56 = vsel %vm119_vm6, %v381_v54, %v374_v51  ;;  %v400_v57 = vld [vmem:[%s399_s5] sm:$0x1]  ;;  %v422_v58 = vrot.slane %v396_v55, 7  ;;  %s1036_s8 = sld [smem:[#allocation3 + $0x302]]  ;;  %s407_s9 = scalar_lea.vmem [#allocation7], %s1014_s25 }
  0x45   :  { %v385_v59 = vadd.f32 %v384_v47, %v382_v56  ;;  %v404_v60 = vld [vmem:[%s403_s7] sm:$0x1]  ;;  %v425_v61 = vrot.slane %v400_v57, 6  ;;  %s1040_s10 = sld [smem:[#allocation3 + $0x303]]  ;;  %s411_s11 = scalar_lea.vmem [#allocation7], %s1017_s1 }
  0x46   :  { %v408_v62 = vld [vmem:[%s407_s9] sm:$0x1]  ;;  %v428_v63 = vrot.slane %v404_v60, 5  ;;  %v442_v0 = vsel %vm107_vm0, %v392_v53, %v422_v58  ;;  %s415_s12 = scalar_lea.vmem [#allocation7], %s1021_s27  ;;  %s1046_s13 = sld [smem:[#allocation3 + $0x304]]  ;;  %v582_v60 = vld [vmem:[#allocation4 + $0x38] sm:$0xff] }
  0x47   :  { %387 = vst [vmem:[#allocation9 + $0x20] sm:$0xff] %v385_v59  ;;  %v412_v1 = vld [vmem:[%s411_s11] sm:$0x1]  ;;  %v431_v2 = vrot.slane %v408_v62, 4  ;;  %v443_v3 = vsel %vm109_vm1, %v442_v0, %v425_v61  ;;  %s419_s14 = scalar_lea.vmem [#allocation7], %s1025_s29  ;;  %s1050_s15 = sld [smem:[#allocation3 + $0x305]] }
  0x48   :  { %v416_v4 = vld [vmem:[%s415_s12] sm:$0x1]  ;;  %v434_v5 = vrot.slane %v412_v1, 3  ;;  %v444_v6 = vsel %vm111_vm2, %v443_v3, %v428_v63  ;;  %s457_s16 = scalar_lea.vmem [#allocation7], %s1029_s4  ;;  %s1054_s17 = sld [smem:[#allocation3 + $0x306]] }
  0x49   :  { %v420_v8 = vld [vmem:[%s419_s14] sm:$0x1]  ;;  %v437_v9 = vrot.slane %v416_v4, 2  ;;  %v445_v10 = vsel %vm113_vm3, %v444_v6, %v431_v2  ;;  %s461_s18 = scalar_lea.vmem [#allocation7], %s1033_s6  ;;  %s1058_s19 = sld [smem:[#allocation3 + $0x307]] }
  0x4a   :  { %v440_v11 = vrot.slane %v420_v8, 1  ;;  %v446_v12 = vsel %vm115_vm4, %v445_v10, %v434_v5  ;;  %v458_v13 = vld [vmem:[%s457_s16] sm:$0x1]  ;;  %s465_s20 = scalar_lea.vmem [#allocation7], %s1036_s8  ;;  %s1062_s21 = sld [smem:[#allocation3 + $0x380]] }
  0x4b   :  { %v447_v14 = vsel %vm117_vm5, %v446_v12, %v437_v9  ;;  %v462_v15 = vld [vmem:[%s461_s18] sm:$0x1]  ;;  %s469_s22 = scalar_lea.vmem [#allocation7], %s1040_s10  ;;  %s1065_s0 = sld [smem:[#allocation3 + $0x381]] }
  0x4c   :  { %v448_v16 = vsel %vm119_vm6, %v447_v14, %v440_v11  ;;  %v466_v17 = vld [vmem:[%s465_s20] sm:$0x1]  ;;  %v488_v18 = vrot.slane %v462_v15, 7  ;;  %s1068_s25 = sld [smem:[#allocation3 + $0x382]]  ;;  %s473_s26 = scalar_lea.vmem [#allocation7], %s1046_s13 }
  0x4d   :  { %v451_v19 = vadd.f32 %v450_v7, %v448_v16  ;;  %v470_v20 = vld [vmem:[%s469_s22] sm:$0x1]  ;;  %v491_v21 = vrot.slane %v466_v17, 6  ;;  %s1072_s1 = sld [smem:[#allocation3 + $0x383]]  ;;  %s477_s2 = scalar_lea.vmem [#allocation7], %s1050_s15 }
  0x4e   :  { %v494_v22 = vrot.slane %v470_v20, 5  ;;  %v508_v23 = vsel %vm107_vm0, %v458_v13, %v488_v18  ;;  %v474_v24 = vld [vmem:[%s473_s26] sm:$0x1]  ;;  %s729_s27 = sld [smem:[#allocation3 + $0x384]]  ;;  %s481_s28 = scalar_lea.vmem [#allocation7], %s1054_s17 }
  0x4f   :  { %453 = vst [vmem:[#allocation9 + $0x28] sm:$0xff] %v451_v19  ;;  %v509_v25 = vsel %vm109_vm1, %v508_v23, %v491_v21  ;;  %v478_v26 = vld [vmem:[%s477_s2] sm:$0x1]  ;;  %v497_v27 = vrot.slane %v474_v24, 4  ;;  %s1077_s29 = sld [smem:[#allocation3 + $0x385]]  ;;  %s485_s30 = scalar_lea.vmem [#allocation7], %s1058_s19 }
  0x50   :  { %v510_v28 = vsel %vm111_vm2, %v509_v25, %v494_v22  ;;  %v482_v29 = vld [vmem:[%s481_s28] sm:$0x1]  ;;  %v500_v30 = vrot.slane %v478_v26, 3  ;;  %s731_s4 = sld [smem:[#allocation3 + $0x386]]  ;;  %s523_s6 = scalar_lea.vmem [#allocation7], %s1062_s21 }
  0x51   :  { %v486_v31 = vld [vmem:[%s485_s30] sm:$0x1]  ;;  %v503_v32 = vrot.slane %v482_v29, 2  ;;  %v511_v33 = vsel %vm113_vm3, %v510_v28, %v497_v27  ;;  %s732_s5 = sld [smem:[#allocation3 + $0x387]]  ;;  %s527_s7 = scalar_lea.vmem [#allocation7], %s1065_s0 }
  0x52   :  { %v506_v34 = vrot.slane %v486_v31, 1  ;;  %v512_v35 = vsel %vm115_vm4, %v511_v33, %v500_v30  ;;  %v524_v38 = vld [vmem:[%s523_s6] sm:$0x1]  ;;  %s531_s8 = scalar_lea.vmem [#allocation7], %s1068_s25  ;;  %s836_s14 = smov [#allocation9]  }
  0x53   :  { %v513_v37 = vsel %vm117_vm5, %v512_v35, %v503_v32  ;;  %v528_v39 = vld [vmem:[%s527_s7] sm:$0x1]  ;;  %s535_s9 = scalar_lea.vmem [#allocation7], %s1072_s1  ;;  %s590_s15 = sshll.u32 %s836_s14, 4  ;;  %s591_s15 = int_to_ptr.vmem [resolvable:$true] %s590_s15 }
  0x54   :  { %v514_v40 = vsel %vm119_vm6, %v513_v37, %v506_v34  ;;  %v532_v41 = vld [vmem:[%s531_s8] sm:$0x1]  ;;  %v554_v42 = vrot.slane %v528_v39, 7  ;;  %s539_s10 = scalar_lea.vmem [#allocation7], %s729_s27  ;;  %s592_s18 = sshll.u32 %s1105_s3, 4  ;;  %s593_s18 = int_to_ptr.hbm [resolvable:$true] %s592_s18 }
  0x55   :  { %v517_v43 = vadd.f32 %v516_v36, %v514_v40  ;;  %v536_v44 = vld [vmem:[%s535_s9] sm:$0x1]  ;;  %v557_v45 = vrot.slane %v532_v41, 6  ;;  %s543_s11 = scalar_lea.vmem [#allocation7], %s1077_s29 }
  0x56   :  { %v540_v46 = vld [vmem:[%s539_s10] sm:$0x1]  ;;  %v560_v47 = vrot.slane %v536_v44, 5  ;;  %v574_v48 = vsel %vm107_vm0, %v524_v38, %v554_v42  ;;  %s547_s12 = scalar_lea.vmem [#allocation7], %s731_s4 }
  0x57   :  { %519 = vst [vmem:[#allocation9 + $0x30] sm:$0xff] %v517_v43  ;;  %v544_v49 = vld [vmem:[%s543_s11] sm:$0x1]  ;;  %v563_v50 = vrot.slane %v540_v46, 4  ;;  %v575_v51 = vsel %vm109_vm1, %v574_v48, %v557_v45  ;;  %s551_s13 = scalar_lea.vmem [#allocation7], %s732_s5 }
  0x58   :  { %v548_v52 = vld [vmem:[%s547_s12] sm:$0x1]  ;;  %v566_v53 = vrot.slane %v544_v49, 3  ;;  %v576_v54 = vsel %vm111_vm2, %v575_v51, %v560_v47 }
  0x59   :  { %v552_v55 = vld [vmem:[%s551_s13] sm:$0x1]  ;;  %v569_v56 = vrot.slane %v548_v52, 2  ;;  %v577_v57 = vsel %vm113_vm3, %v576_v54, %v563_v50 }
  0x5a   :  { %v572_v58 = vrot.slane %v552_v55, 1  ;;  %v578_v59 = vsel %vm115_vm4, %v577_v57, %v566_v53 }
  0x5b   :  { %v579_v61 = vsel %vm117_vm5, %v578_v59, %v569_v56 }
  0x5c   :  { %v580_v62 = vsel %vm119_vm6, %v579_v61, %v572_v58 }
  0x5d   :  { %v583_v63 = vadd.f32 %v582_v60, %v580_v62 }
  0x5f   :  { %585 = vst [vmem:[#allocation9 + $0x38] sm:$0xff] %v583_v63 }
  0x60   :  { %598 = dma.vmem_to_hbm [thread:$0]  %s591_s15, 1024, %s593_s18, [#allocation6], %s833_s23, %s833_s23, %s834_s24  }
  0x61   :  { %829 = dma.done.wait [#allocation6], 1024  }
  0x62   :  { %830 = vsyncadd [#allocation6], 4294966272 }
  0x63   :  { %603 = vsyncpa [#allocation5], 1 }
  0x64   :  { %604 = vsyncpa [#allocation8], 1 }
  0x65   :  { %605 = vsyncpa [#allocation6], 1 }

</bundles_post_ra>
